<compile_context>
chip_gen: v7x
topology: tpu7x:2x2x1
jax: 0.10.0
libtpu: 0.0.40
codegen_flags: <defaults>
</compile_context>

<pallas_src>
import functools

import jax
import jax.numpy as jnp
import numpy as np
from jax.experimental import pallas as pl
from jax.experimental.pallas import tpu as pltpu


def _round_up(x, m):
    return (x + m - 1) // m * m


def _vmem_limit_bytes():
    """~3/4 of physical VMEM per generation (96 MiB v5e/v6e, 48 MiB v7x)."""
    try:
        cap = pltpu.get_tpu_info().vmem_capacity_bytes
    except Exception:
        cap = 64 * 1024 * 1024
    return max(32 * 2**20, min(int(cap) * 3 // 4, 100 * 2**20))


def _pick_cout_tile(cop, kh, kwc, howo):
    """Full-Cout tile (weights fully resident, 1-D grid over batch) unless the
    weight slab / output block would be uncomfortably large."""
    w_bytes = kh * kwc * cop * 2          # bf16 weight slab
    o_bytes = howo * cop * 4              # f32 output block (double-buffered)
    if w_bytes <= 8 * 2**20 and o_bytes <= 6 * 2**20:
        return cop
    if cop % 256 == 0:
        return 256
    return 128


def _conv_bn_kernel(x_ref, w_ref, b_ref, o_ref, *, kh_taps, kw_taps):
    # x_ref: (1, Hp, Wp, Cin)   bf16  spatially padded input image
    # w_ref: (KH, KW*Cin, tn)   bf16  conv weights with BN scale pre-folded
    # b_ref: (1, tn)            f32   folded BN/conv bias
    # o_ref: (1, Ho*Wo, tn)     out dtype
    _, hp, wp, cin = x_ref.shape
    ho = hp - kh_taps + 1
    wo = wp - kw_taps + 1
    kwc = kw_taps * cin

    x = x_ref[0]                                           # (Hp, Wp, Cin)
    # Fold the KW taps into the contraction (lane) axis once per image block.
    xw = jnp.concatenate(
        [x[:, kw:kw + wo, :] for kw in range(kw_taps)], axis=-1)  # (Hp, Wo, KW*Cin)

    acc = jnp.zeros((ho * wo, o_ref.shape[-1]), jnp.float32)
    # KH taps are slab slices along the leading axis (no lane relayout),
    # accumulated through KH MXU matmuls with K = KW*Cin, f32 accumulation.
    for kh in range(kh_taps):
        p = xw[kh:kh + ho].reshape(ho * wo, kwc)
        acc = acc + jnp.dot(p, w_ref[kh], preferred_element_type=jnp.float32)

    o_ref[0] = (acc + b_ref[...]).astype(o_ref.dtype)


def basic_conv2d(x_nchw, weight, conv_bias, bn_params, kernel_size, bn=True,
                 eps=1e-5, compute_dtype=jnp.bfloat16, out_dtype=jnp.float32):
    """Conv2d(stride=1, padding=(KH//2, KW//2)) + optional BatchNorm2d (inference).

    x_nchw    : (N, Cin, H, W)      float32
    weight    : (Cout, Cin, KH, KW) float32 (PyTorch layout)
    conv_bias : (Cout,)
    bn_params : dict with gamma, beta, running_mean, running_var, each (Cout,)
    Returns (N, Cout, Ho, Wo) float32 (Ho == H, Wo == W for odd kernels).
    """
    N, Cin, H, W = x_nchw.shape
    Cout = weight.shape[0]
    KH, KW = kernel_size
    ph, pw = KH // 2, KW // 2
    Hp, Wp = H + 2 * ph, W + 2 * pw
    Ho, Wo = Hp - KH + 1, Wp - KW + 1          # handles even kernel sizes too
    KWC = KW * Cin
    HoWo = Ho * Wo

    # --- glue (plain JAX): layout, spatial pad, BN/bias folding -------------
    x_nhwc = jnp.transpose(x_nchw, (0, 2, 3, 1))
    xp = jnp.pad(x_nhwc, ((0, 0), (ph, ph), (pw, pw), (0, 0))).astype(compute_dtype)

    if bn:
        gamma = bn_params["gamma"].astype(jnp.float32)
        beta = bn_params["beta"].astype(jnp.float32)
        mean = bn_params["running_mean"].astype(jnp.float32)
        var = bn_params["running_var"].astype(jnp.float32)
        scale = gamma / jnp.sqrt(var + eps)
        bias = beta + (conv_bias.astype(jnp.float32) - mean) * scale
    else:
        scale = jnp.ones((Cout,), jnp.float32)
        bias = conv_bias.astype(jnp.float32)

    # weight (Cout, Cin, KH, KW) -> (KH, KW, Cin, Cout); fold BN scale into the
    # output-channel columns in f32; reshape so the (kw, cin) ordering matches
    # the in-kernel lane concat; pad Cout to a lane-dense multiple of 128.
    w = jnp.transpose(weight, (2, 3, 1, 0)).astype(jnp.float32)
    w = w * scale[None, None, None, :]
    w = w.reshape(KH, KWC, Cout)

    Cop = _round_up(Cout, 128)
    w = jnp.pad(w, ((0, 0), (0, 0), (0, Cop - Cout))).astype(compute_dtype)
    bias_p = jnp.pad(bias, (0, Cop - Cout)).reshape(1, Cop)

    tn = _pick_cout_tile(Cop, KH, KWC, HoWo)
    grid = (Cop // tn, N)                      # batch innermost: weights stay resident

    out3d = pl.pallas_call(
        functools.partial(_conv_bn_kernel, kh_taps=KH, kw_taps=KW),
        out_shape=jax.ShapeDtypeStruct((N, HoWo, Cop), out_dtype),
        grid_spec=pltpu.PrefetchScalarGridSpec(
            num_scalar_prefetch=0,
            grid=grid,
            in_specs=[
                # one padded image per step, streamed once (when Cop // tn == 1)
                pl.BlockSpec((1, Hp, Wp, Cin), lambda j, n: (n, 0, 0, 0)),
                # folded weights: constant along the inner batch axis -> resident
                pl.BlockSpec((KH, KWC, tn), lambda j, n: (0, 0, j)),
                # folded bias: also resident
                pl.BlockSpec((1, tn), lambda j, n: (0, j)),
            ],
            out_specs=pl.BlockSpec((1, HoWo, tn), lambda j, n: (n, 0, j)),
        ),
        compiler_params=pltpu.CompilerParams(
            dimension_semantics=("parallel", "parallel"),
            vmem_limit_bytes=_vmem_limit_bytes(),
        ),
    )(xp, w, bias_p)

    out = out3d[:, :, :Cout].reshape(N, Ho, Wo, Cout).astype(jnp.float32)
    return jnp.transpose(out, (0, 3, 1, 2))     # NCHW, matches the PyTorch module


def _reference(x_nchw, weight, conv_bias, bn_params, kernel_size, bn=True,
               eps=1e-5):
    KH, KW = kernel_size
    ph, pw = KH // 2, KW // 2
    h = jax.lax.conv_general_dilated(
        x_nchw, weight, window_strides=(1, 1),
        padding=((ph, ph), (pw, pw)),
        dimension_numbers=("NCHW", "OIHW", "NCHW"))
    h = h + conv_bias.reshape(1, -1, 1, 1)
    if bn:
        scale = bn_params["gamma"] / jnp.sqrt(bn_params["running_var"] + eps)
        bias = bn_params["beta"] - bn_params["running_mean"] * scale
        h = h * scale.reshape(1, -1, 1, 1) + bias.reshape(1, -1, 1, 1)
    return h


if __name__ == "__main__":
    N, Cin, Cout, H, W = 2, 4, 8, 16, 16
    kernel_size = (3, 3)

    key = jax.random.PRNGKey(0)
    kx, kw, kb, kg, kbe, km, kv = jax.random.split(key, 7)

    x = jax.random.normal(kx, (N, Cin, H, W), jnp.float32)
    weight = jax.random.normal(kw, (Cout, Cin, *kernel_size), jnp.float32) * 0.1
    conv_bias = jax.random.normal(kb, (Cout,), jnp.float32) * 0.1
    bn_params = {
        "gamma": 1.0 + 0.1 * jax.random.normal(kg, (Cout,), jnp.float32),
        "beta": 0.1 * jax.random.normal(kbe, (Cout,), jnp.float32),
        "running_mean": 0.1 * jax.random.normal(km, (Cout,), jnp.float32),
        "running_var": jnp.abs(jax.random.normal(kv, (Cout,), jnp.float32)) + 0.5,
    }

    # bf16 matmul operands (with BN scale folded into the weights), f32
    # accumulation -> compare to f32 reference with a bf16-sized tolerance.
    out = basic_conv2d(x, weight, conv_bias, bn_params, kernel_size, bn=True)
    out = jax.block_until_ready(out)
    ref = _reference(x, weight, conv_bias, bn_params, kernel_size, bn=True)
    np.testing.assert_allclose(np.asarray(out), np.asarray(ref),
                               rtol=3e-2, atol=3e-2)

    out_nobn = basic_conv2d(x, weight, conv_bias, bn_params, kernel_size,
                            bn=False)
    out_nobn = jax.block_until_ready(out_nobn)
    ref_nobn = _reference(x, weight, conv_bias, bn_params, kernel_size,
                          bn=False)
    np.testing.assert_allclose(np.asarray(out_nobn), np.asarray(ref_nobn),
                               rtol=3e-2, atol=3e-2)

    print("KERNEL_OK")
</pallas_src>

<mosaic_0001>
module attributes {stable_mosaic.version = 11 : i64} {
  func.func @_conv_bn_kernel(%arg0: i32, %arg1: i32, %arg2: memref<1x18x18x4xbf16, #tpu.memory_space<vmem>>, %arg3: memref<3x12x128xbf16, #tpu.memory_space<vmem>>, %arg4: memref<1x128xf32, #tpu.memory_space<vmem>>, %arg5: memref<1x256x128xf32, #tpu.memory_space<vmem>>) attributes {dimension_semantics = [#tpu.dimension_semantics<parallel>, #tpu.dimension_semantics<parallel>], iteration_bounds = array<i64: 1, 2>, scalar_prefetch = 0 : i64, scratch_operands = 0 : i64, tpu.core_type = #tpu.core_type<tc>, window_params = [{transform_indices = @transform_0, window_bounds = array<i64: 1, 18, 18, 4>}, {transform_indices = @transform_1, window_bounds = array<i64: 3, 12, 128>}, {transform_indices = @transform_2, window_bounds = array<i64: 1, 128>}, {transform_indices = @transform_3, window_bounds = array<i64: 1, 256, 128>}]} {
    %c0 = arith.constant 0 : index
    %c0_0 = arith.constant 0 : index
    %c0_1 = arith.constant 0 : index
    %c0_2 = arith.constant 0 : index
    %0 = vector.load %arg2[%c0, %c0_0, %c0_1, %c0_2] : memref<1x18x18x4xbf16, #tpu.memory_space<vmem>>, vector<1x18x18x4xbf16>
    %1 = vector.shape_cast %0 : vector<1x18x18x4xbf16> to vector<18x18x4xbf16>
    %2 = vector.extract_strided_slice %1 {offsets = [0, 0, 0], sizes = [18, 16, 4], strides = [1, 1, 1]} : vector<18x18x4xbf16> to vector<18x16x4xbf16>
    %3 = vector.extract_strided_slice %1 {offsets = [0, 1, 0], sizes = [18, 16, 4], strides = [1, 1, 1]} : vector<18x18x4xbf16> to vector<18x16x4xbf16>
    %4 = vector.extract_strided_slice %1 {offsets = [0, 2, 0], sizes = [18, 16, 4], strides = [1, 1, 1]} : vector<18x18x4xbf16> to vector<18x16x4xbf16>
    %5 = tpu.concatenate %2, %3, %4 in 2 : vector<18x16x4xbf16>, vector<18x16x4xbf16>, vector<18x16x4xbf16> -> vector<18x16x12xbf16>
    %cst = arith.constant 0.000000e+00 : f32
    %6 = vector.broadcast %cst : f32 to vector<256x128xf32>
    %7 = vector.extract_strided_slice %5 {offsets = [0, 0, 0], sizes = [16, 16, 12], strides = [1, 1, 1]} : vector<18x16x12xbf16> to vector<16x16x12xbf16>
    %8 = vector.shape_cast %7 : vector<16x16x12xbf16> to vector<256x12xbf16>
    %c0_3 = arith.constant 0 : index
    %c0_4 = arith.constant 0 : index
    %c0_5 = arith.constant 0 : index
    %9 = vector.load %arg3[%c0_3, %c0_4, %c0_5] : memref<3x12x128xbf16, #tpu.memory_space<vmem>>, vector<1x12x128xbf16>
    %10 = vector.shape_cast %9 : vector<1x12x128xbf16> to vector<12x128xbf16>
    %cst_6 = arith.constant dense<0.000000e+00> : vector<256x128xf32>
    %11 = tpu.matmul %8, %10, %cst_6 {dimension_numbers = #tpu.dot_dimension_numbers<[1], [0], [0], [1], [0, 0, 1, 1], [], []>} : vector<256x12xbf16>, vector<12x128xbf16>, vector<256x128xf32> -> vector<256x128xf32>
    %12 = arith.addf %6, %11 : vector<256x128xf32>
    %13 = vector.extract_strided_slice %5 {offsets = [1, 0, 0], sizes = [16, 16, 12], strides = [1, 1, 1]} : vector<18x16x12xbf16> to vector<16x16x12xbf16>
    %14 = vector.shape_cast %13 : vector<16x16x12xbf16> to vector<256x12xbf16>
    %c1 = arith.constant 1 : index
    %c0_7 = arith.constant 0 : index
    %c0_8 = arith.constant 0 : index
    %15 = vector.load %arg3[%c1, %c0_7, %c0_8] : memref<3x12x128xbf16, #tpu.memory_space<vmem>>, vector<1x12x128xbf16>
    %16 = vector.shape_cast %15 : vector<1x12x128xbf16> to vector<12x128xbf16>
    %cst_9 = arith.constant dense<0.000000e+00> : vector<256x128xf32>
    %17 = tpu.matmul %14, %16, %cst_9 {dimension_numbers = #tpu.dot_dimension_numbers<[1], [0], [0], [1], [0, 0, 1, 1], [], []>} : vector<256x12xbf16>, vector<12x128xbf16>, vector<256x128xf32> -> vector<256x128xf32>
    %18 = arith.addf %12, %17 : vector<256x128xf32>
    %19 = vector.extract_strided_slice %5 {offsets = [2, 0, 0], sizes = [16, 16, 12], strides = [1, 1, 1]} : vector<18x16x12xbf16> to vector<16x16x12xbf16>
    %20 = vector.shape_cast %19 : vector<16x16x12xbf16> to vector<256x12xbf16>
    %c2 = arith.constant 2 : index
    %c0_10 = arith.constant 0 : index
    %c0_11 = arith.constant 0 : index
    %21 = vector.load %arg3[%c2, %c0_10, %c0_11] : memref<3x12x128xbf16, #tpu.memory_space<vmem>>, vector<1x12x128xbf16>
    %22 = vector.shape_cast %21 : vector<1x12x128xbf16> to vector<12x128xbf16>
    %cst_12 = arith.constant dense<0.000000e+00> : vector<256x128xf32>
    %23 = tpu.matmul %20, %22, %cst_12 {dimension_numbers = #tpu.dot_dimension_numbers<[1], [0], [0], [1], [0, 0, 1, 1], [], []>} : vector<256x12xbf16>, vector<12x128xbf16>, vector<256x128xf32> -> vector<256x128xf32>
    %24 = arith.addf %18, %23 : vector<256x128xf32>
    %c0_13 = arith.constant 0 : index
    %c0_14 = arith.constant 0 : index
    %25 = vector.load %arg4[%c0_13, %c0_14] : memref<1x128xf32, #tpu.memory_space<vmem>>, vector<1x128xf32>
    %26 = vector.broadcast %25 : vector<1x128xf32> to vector<256x128xf32>
    %27 = arith.addf %24, %26 : vector<256x128xf32>
    %c0_15 = arith.constant 0 : index
    %c0_16 = arith.constant 0 : index
    %c0_17 = arith.constant 0 : index
    %28 = vector.load %arg5[%c0_15, %c0_16, %c0_17] : memref<1x256x128xf32, #tpu.memory_space<vmem>>, vector<1x256x128xf32>
    %29 = vector.shape_cast %28 : vector<1x256x128xf32> to vector<256x128xf32>
    %30 = vector.shape_cast %27 : vector<256x128xf32> to vector<1x256x128xf32>
    tpu.vector_store %arg5[%c0_15, %c0_16, %c0_17], %30 {strides = array<i32>} : memref<1x256x128xf32, #tpu.memory_space<vmem>>, vector<1x256x128xf32>,
    return
  }
  func.func @transform_0(%arg0: i32, %arg1: i32) -> (i32, i32, i32, i32) {
    %c0_i32 = arith.constant 0 : i32
    %c0_i32_0 = arith.constant 0 : i32
    %c0_i32_1 = arith.constant 0 : i32
    %c0_i32_2 = arith.constant 0 : i32
    return %arg1, %c0_i32, %c0_i32_0, %c0_i32_1 : i32, i32, i32, i32
  }
  func.func @transform_1(%arg0: i32, %arg1: i32) -> (i32, i32, i32) {
    %c0_i32 = arith.constant 0 : i32
    %c0_i32_0 = arith.constant 0 : i32
    %c0_i32_1 = arith.constant 0 : i32
    return %c0_i32, %c0_i32_0, %arg0 : i32, i32, i32
  }
  func.func @transform_2(%arg0: i32, %arg1: i32) -> (i32, i32) {
    %c0_i32 = arith.constant 0 : i32
    %c0_i32_0 = arith.constant 0 : i32
    return %c0_i32, %arg0 : i32, i32
  }
  func.func @transform_3(%arg0: i32, %arg1: i32) -> (i32, i32, i32) {
    %c0_i32 = arith.constant 0 : i32
    %c0_i32_0 = arith.constant 0 : i32
    return %arg1, %c0_i32, %arg0 : i32, i32, i32
  }
}

</mosaic_0001>

<bundles_post_ra>
// kernel: tpu_custom_call.1
= control target key start
LH: loop header
LB: loop body
LE: loop exit
PB: predicated region body
PF: predicated region fallthrough
CT: control target
= control target key end

     0   :  { %8 = vsyncpa [#allocation3], 0  ;;  %s2662_s0 = inlined_call_operand.vmem [shape: bf16[2,18,18,4], index: 0, kind: input, shape index: {}]   ;;  %s2663_s1 = inlined_call_operand.vmem [shape: bf16[3,12,128], index: 1, kind: input, shape index: {}]   ;;  %s2664_s2 = inlined_call_operand.vmem [shape: f32[1,128], index: 2, kind: input, shape index: {}]   ;;  %s2665_s3 = inlined_call_operand.hbm [shape: f32[2,256,128], index: 3, kind: output, shape index: {}]  }
   0x1   :  { %10 = vsyncpa [#allocation3 + $0x1], 0  ;;  %s2133_s12 = smov 0   ;;  %s2135_s13 = smov 0  }
   0x2   :  { %s2137_s14 = smov 0   ;;  %s2139_s15 = smov 0  }
   0x3   :  { %s2141_s16 = smov 0   ;;  %s2143_s17 = smov 0  }
   0x4 LB: > { %s1601_s18 = sadd.s32 4294967295, %s2107_s17   ;;  %s1602_s19 = sadd.s32 4294967294, %s2107_s17   ;;  %s2107_s17 = sphi %s2143_s17, %s16_s17   ;;  %s2103_s16 = sphi %s2141_s16, %s2672_s16   ;;  %s2099_s15 = sphi %s2139_s15, %s2671_s15   ;;  %s2095_s14 = sphi %s2137_s14, %s2670_s14   ;;  %s2091_s13 = sphi %s2135_s13, %s2669_s13   ;;  %s2087_s12 = sphi %s2133_s12, %s2668_s12  }
   0x5   : > { %s25_s20 = sadd.s32 1, %s2103_s16  ;;  %s115_s21 = sadd.s32 1, %s2095_s14 }
   0x6   : > { %p26_p0 = scmp.ge.s32.totalorder %s25_s20, 2  ;;  %p125_p1 = scmp.ne.s32.totalorder %s2095_s14, %s2091_s13 }
   0x7   : > { %p126_p2 = scmp.eq.s32.totalorder %s1601_s18, 1  ;;  %p131_p3 = scmp.ne.s32.totalorder %s2091_s13, %s2087_s12 }
   0x8   : > { %s2674_s20 = smov (%p26_p0, %s25_s20), 0  ;;  %p132_p5 = scmp.eq.s32.totalorder %s1602_s19, 1 }
   0x9   : > { %p2173_p4 = por %p126_p2, %p125_p1  ;;  %s110_s23 = ssub.s32 %s2103_s16, %s2674_s20 }
   0xa   : > { %p1607_p6 = scmp.ge.s32.totalorder %s2107_s17, 1  ;;  %p113_p7 = scmp.eq.s32.totalorder %s110_s23, 0 }
   0xb   : > { %p2180_p8 = por %p132_p5, %p131_p3  ;;  %p171_p9 = scmp.lt.s32.totalorder %s2107_s17, 3 }
   0xc   : > { %s2186_s25 = scalar_select %p113_p7, %s2095_s14, %s115_s21  }
   0xd   : > { %p172_p10 = pnand %p1607_p6, %p171_p9 }
   0xe   : > { %p202_p11 = scmp.lt.s32.totalorder (!%p172_p10), %s2099_s15, 1  ;;  %vm666_vm0 = vcmask (!%p172_p10), 1046528   ;;  %vm413_vm1 = vsmask.f32 (!%p172_p10), 7424  ;;  %s2109_s4 = smov (!%p172_p10), 8   ;;  %vm874_vm2 = vcmask (!%p172_p10), 1045504  }
   0xf   : > { %175 = sbr.rel (%p172_p10) target bundleno = 482 (0x1e2), region = 32  ;;  %s2110_s5 = smov (!%p172_p10), 4   ;;  %vm757_vm3 = vcmask (!%p172_p10), 31744   ;;  %vm794_vm4 = vcmask (!%p172_p10), 64512   ;;  %vm841_vm5 = vcmask (!%p172_p10), 97280  }
  0x10   : > { %s199_s18 = sand.u32 (!%p172_p10), 1, %s2091_s13   ;;  %s2111_s7 = smov (!%p172_p10), [#allocation2]  }
  0x11   : > { %s1608_s19 = sshll.u32 (!%p172_p10), %s199_s18, 8  ;;  %s2033_s8 = sshll.u32 (!%p172_p10), %s2111_s7, 4  ;;  %s2034_s8 = int_to_ptr.vmem [resolvable:$false] %s2033_s8 }
  0x12   : > { %s2035_s9 = scalar_lea.vmem (!%p172_p10), %s2034_s8, 8192 }
  0x16   : > { %s203_s26 = scalar_select %p202_p11, %s2099_s15, 1 }
  0x18   : > { %s1931_s27 = smul.u32 216, %s203_s26  ;;  %s2540_s26 = scalar_lea.vmem [#allocation2], %s1608_s19 }
  0x19   : > { %s1502_s28 = sshll.u32 %s2540_s26, 4  ;;  %s2609_s28 = int_to_ptr.vmem [resolvable:$true] %s1502_s28 }
  0x1a   : > { %s2193_s30 = scalar_lea.vmem %s2662_s0, %s1931_s27  ;;  %s1707_s27 = sshll.u32 %s2099_s15, 12 }
  0x1b   : > { %v2196_v0 = vld [vmem:[%s2193_s30] sm:$0xff]   ;;  %v1991_v1 = vld [vmem:[%s2193_s30 + $0x8] ss:$0 sps:$4 sm:$0x11]   ;;  %v2200_v2 = vld [vmem:[%s2193_s30 + $0x18] sm:$0xff]   ;;  %s2615_s15 = scalar_lea.sflag [#allocation3], %s199_s18  ;;  %p2036_p1 = scmp.lt.s32.totalorder %s2609_s28, %s2034_s8 }
  0x1c   : > { %v667_v3 = vrot.slane %v2196_v0, 1  ;;  %v668_v4 = vrot.slane %v1991_v1, 1  ;;  %v415_v5 = vshrl.u32 %v2196_v0, 16  ;;  %v417_v6 = vshll.u32 %v2196_v0, 16  ;;  %v2210_v13 = vld [vmem:[%s2193_s30 + $0xc] sm:$0xff]   ;;  %v2223_v31 = vld [vmem:[%s2193_s30 + $0x24] sm:$0xff]  }
  0x1d   : > { %v422_v7 = vshll.u32 %v1991_v1, 16  ;;  %v1993_v8 = vld [vmem:[%s2193_s30 + $0x20] ss:$0 sps:$4 sm:$0x11]   ;;  %v439_v9 = vshrl.u32 %v2200_v2, 16  ;;  %v441_v10 = vshll.u32 %v2200_v2, 16 }
  0x1e   : > { %v669_v11 = vsel %vm666_vm0, %v667_v3, %v668_v4  ;;  %v419_v12 = vrot.slane %v417_v6, 1  ;;  %v446_v16 = vshll.u32 %v1993_v8, 16  ;;  %v1995_v17 = vld [vmem:[%s2193_s30 + $0x14] ss:$0 sps:$4 sm:$0x11]   ;;  %v427_v19 = vshrl.u32 %v2210_v13, 16 }
  0x1f   : > { %721 = vrot.lane.b32.xlu1 %v669_v11, %s2109_s4  ;;  %v424_v14 = vrot.slane %v422_v7, 1  ;;  %v443_v15 = vrot.slane %v441_v10, 1  ;;  %v429_v20 = vshll.u32 %v2210_v13, 16  ;;  %v673_v21 = vrot.slane %v2200_v2, 1  ;;  %v2218_v22 = vld [vmem:[%s2193_s30 + $0x30] sm:$0xff]   ;;  %v2229_v35 = vld [vmem:[%s2193_s30 + $0x48] sm:$0xff]  }
  0x20   : > { %v420_v18 = vor.u32 %v419_v12, %v415_v5  ;;  %v448_v24 = vrot.slane %v446_v16, 1  ;;  %v434_v25 = vshll.u32 %v1995_v17, 16  ;;  %v674_v26 = vrot.slane %v1993_v8, 1  ;;  %v1997_v34 = vld [vmem:[%s2193_s30 + $0x38] ss:$0 sps:$4 sm:$0x11]  }
  0x21   : > { %v444_v23 = vor.u32 %v443_v15, %v439_v9  ;;  %v431_v28 = vrot.slane %v429_v20, 1  ;;  %v670_v29 = vrot.slane %v2210_v13, 1  ;;  %v671_v30 = vrot.slane %v1995_v17, 1  ;;  %v1999_v42 = vld [vmem:[%s2193_s30 + $0x2c] ss:$0 sps:$4 sm:$0x11]  }
  0x22   : > { %v425_v27 = vsel %vm413_vm1, %v420_v18, %v424_v14  ;;  %v436_v33 = vrot.slane %v434_v25, 1  ;;  %v463_v37 = vshrl.u32 %v2218_v22, 16  ;;  %v465_v38 = vshll.u32 %v2218_v22, 16  ;;  %v2241_v47 = vld [vmem:[%s2193_s30 + $0x3c] sm:$0xff]   ;;  %v2262_v12 = vld [vmem:[%s2193_s30 + $0x54] sm:$0xff]   ;;  %s2029_s6 = scalar_lea.vmem %s2609_s28, 4096 }
  0x23   : > { %630 = vrot.lane.b32.xlu0 %v425_v27, %s2110_s5  ;;  %v449_v32 = vsel %vm413_vm1, %v444_v23, %v448_v24  ;;  %v432_v36 = vor.u32 %v431_v28, %v427_v19  ;;  %v675_v39 = vsel %vm666_vm0, %v673_v21, %v674_v26  ;;  %v672_v40 = vsel %vm666_vm0, %v670_v29, %v671_v30  ;;  %v2001_v57 = vld [vmem:[%s2193_s30 + $0x50] ss:$0 sps:$4 sm:$0x11]   ;;  %v2003_v1 = vld [vmem:[%s2193_s30 + $0x44] ss:$0 sps:$4 sm:$0x11]   ;;  %p2030_p12 = scmp.ne.s32.totalorder %s2609_s28, %s2029_s6  ;;  %p2037_p2 = scmp.lt.s32.totalorder %s2035_s9, %s2029_s6 }
  0x24   : > { %634 = vrot.lane.b32.xlu1 %v449_v32, %s2110_s5  ;;  %v470_v41 = vshll.u32 %v1997_v34, 16  ;;  %v467_v44 = vrot.slane %v465_v38, 1  ;;  %v451_v45 = vshrl.u32 %v2223_v31, 16  ;;  %v453_v46 = vshll.u32 %v2223_v31, 16  ;;  %v2259_v7 = vld [vmem:[%s2193_s30 + $0x60] sm:$0xff]   ;;  %v2271_v21 = vld [vmem:[%s2193_s30 + $0x78] sm:$0xff]  }
  0x25   : > { %v437_v43 = vsel %vm413_vm1, %v432_v36, %v436_v33  ;;  %v458_v49 = vshll.u32 %v1999_v42, 16  ;;  %v679_v50 = vrot.slane %v2218_v22, 1  ;;  %v680_v51 = vrot.slane %v1997_v34, 1  ;;  %v2005_v14 = vld [vmem:[%s2193_s30 + $0x68] ss:$0 sps:$4 sm:$0x11]   ;;  %p2031_p13 = pnand %p2030_p12, %p2173_p4  ;;  %p2038_p3 = por %p2037_p2, %p2036_p1 }
  0x26   : > { %v472_v48 = vrot.slane %v470_v41, 1  ;;  %v468_v52 = vor.u32 %v467_v44, %v463_v37  ;;  %v455_v53 = vrot.slane %v453_v46, 1  ;;  %v676_v54 = vrot.slane %v2223_v31, 1  ;;  %v2007_v26 = vld [vmem:[%s2193_s30 + $0x5c] ss:$0 sps:$4 sm:$0x11]  }
  0x27   : > { %632 = vrot.lane.b32.xlu0 %v437_v43, %s2110_s5  ;;  %v677_v55 = vrot.slane %v1999_v42, 1  ;;  %v460_v56 = vrot.slane %v458_v49, 1  ;;  %v487_v58 = vshrl.u32 %v2229_v35, 16  ;;  %v489_v59 = vshll.u32 %v2229_v35, 16  ;;  %v2281_v34 = vld [vmem:[%s2193_s30 + $0x6c] sm:$0xff]   ;;  %p2032_p0 = pneg %p2031_p13 }
  0x28   : > { %725 = vrot.lane.b32.xlu1 %v675_v39, %s2109_s4  ;;  %v473_v60 = vsel %vm413_vm1, %v468_v52, %v472_v48  ;;  %v456_v61 = vor.u32 %v455_v53, %v451_v45  ;;  %v494_v63 = vshll.u32 %v2001_v57, 16  ;;  %v477_v3 = vshll.u32 %v2241_v47, 16  ;;  %v2009_v38 = vld [vmem:[%s2193_s30 + $0x80] ss:$0 sps:$4 sm:$0x11]  }
  0x29   : > { %v491_v62 = vrot.slane %v489_v59, 1  ;;  %v681_v5 = vsel %vm666_vm0, %v679_v50, %v680_v51  ;;  %v475_v6 = vshrl.u32 %v2241_v47, 16  ;;  %v482_v11 = vshll.u32 %v2003_v1, 16  ;;  %v2011_v45 = vld [vmem:[%s2193_s30 + $0x74] ss:$0 sps:$4 sm:$0x11]   ;;  %p2039_p5 = pnand %p2038_p3, %p2032_p0 }
  0x2a   : > { %v461_v4 = vsel %vm413_vm1, %v456_v61, %v460_v56  ;;  %v496_v9 = vrot.slane %v494_v63, 1  ;;  %v479_v10 = vrot.slane %v477_v3, 1  ;;  %v678_v15 = vsel %vm666_vm0, %v676_v54, %v677_v55  ;;  %v2297_v55 = vld [vmem:[%s2193_s30 + $0x90] sm:$0xff]   ;;  %v2305_v63 = vld [vmem:[%s2193_s30 + $0x84] sm:$0xff]  }
  0x2b   : > { %723 = vrot.lane.b32.xlu0 %v672_v40, %s2109_s4  ;;  %v492_v8 = vor.u32 %v491_v62, %v487_v58  ;;  %v685_v16 = vrot.slane %v2229_v35, 1  ;;  %v484_v18 = vrot.slane %v482_v11, 1  ;;  %v686_v19 = vrot.slane %v2001_v57, 1 }
  0x2c   : > { %638 = vrot.lane.b32.xlu1 %v473_v60, %s2110_s5  ;;  %v480_v17 = vor.u32 %v479_v10, %v475_v6  ;;  %v513_v20 = vshll.u32 %v2259_v7, 16  ;;  %v511_v24 = vshrl.u32 %v2259_v7, 16  ;;  %v518_v25 = vshll.u32 %v2005_v14, 16  ;;  %v2015_v10 = vld [vmem:[%s2193_s30 + $0x8c] ss:$0 sps:$4 sm:$0x11]  }
  0x2d   : > { %v497_v23 = vsel %vm413_vm1, %v492_v8, %v496_v9  ;;  %v501_v27 = vshll.u32 %v2262_v12, 16  ;;  %v682_v28 = vrot.slane %v2241_v47, 1  ;;  %v683_v30 = vrot.slane %v2003_v1, 1  ;;  %v2312_v8 = vld [vmem:[%s2193_s30 + $0xa8] sm:$0xff]  }
  0x2e   : > { %v515_v29 = vrot.slane %v513_v20, 1  ;;  %v499_v32 = vshrl.u32 %v2262_v12, 16  ;;  %v506_v33 = vshll.u32 %v2007_v26, 16  ;;  %v485_v36 = vsel %vm413_vm1, %v480_v17, %v484_v18 }
  0x2f   : > { %636 = vrot.lane.b32.xlu0 %v461_v4, %s2110_s5  ;;  %v503_v37 = vrot.slane %v501_v27, 1  ;;  %v687_v39 = vsel %vm666_vm0, %v685_v16, %v686_v19  ;;  %v520_v41 = vrot.slane %v518_v25, 1  ;;  %v537_v42 = vshll.u32 %v2271_v21, 16  ;;  %v2013_v4 = vld [vmem:[%s2193_s30 + $0x98] ss:$0 sps:$4 sm:$0x11]  }
  0x30   : > { %729 = vrot.lane.b32.xlu1 %v681_v5, %s2109_s4  ;;  %v516_v40 = vor.u32 %v515_v29, %v511_v24  ;;  %v508_v43 = vrot.slane %v506_v33, 1  ;;  %v691_v44 = vrot.slane %v2259_v7, 1  ;;  %v684_v46 = vsel %vm666_vm0, %v682_v28, %v683_v30 }
  0x31   : > { %v504_v48 = vor.u32 %v503_v37, %v499_v32  ;;  %v542_v49 = vshll.u32 %v2009_v38, 16  ;;  %v525_v50 = vshll.u32 %v2281_v34, 16  ;;  %v692_v52 = vrot.slane %v2005_v14, 1  ;;  %v2331_v32 = vld [vmem:[%s2193_s30 + $0x9c] sm:$0xff]  }
  0x32   : > { %v521_v51 = vsel %vm413_vm1, %v516_v40, %v520_v41  ;;  %v535_v53 = vshrl.u32 %v2271_v21, 16  ;;  %v539_v54 = vrot.slane %v537_v42, 1  ;;  %v688_v56 = vrot.slane %v2262_v12, 1 }
  0x33   : > { %727 = vrot.lane.b32.xlu0 %v678_v15, %s2109_s4  ;;  %v689_v57 = vrot.slane %v2007_v26, 1  ;;  %v523_v58 = vshrl.u32 %v2281_v34, 16  ;;  %v509_v59 = vsel %vm413_vm1, %v504_v48, %v508_v43  ;;  %v544_v60 = vrot.slane %v542_v49, 1 }
  0x34   : > { %642 = vrot.lane.b32.xlu1 %v497_v23, %s2110_s5  ;;  %v527_v61 = vrot.slane %v525_v50, 1  ;;  %v530_v62 = vshll.u32 %v2011_v45, 16  ;;  %v693_v1 = vsel %vm666_vm0, %v691_v44, %v692_v52  ;;  %v540_v3 = vor.u32 %v539_v54, %v535_v53  ;;  %v2322_v23 = vld [vmem:[%s2193_s30 + $0xb0] ss:$0 sps:$4 sm:$0x11]   ;;  %v2350_v53 = vld [vmem:[%s2193_s30 + $0xc0] sm:$0xff]  }
  0x35   : > { %v561_v5 = vshll.u32 %v2297_v55, 16  ;;  %v697_v6 = vrot.slane %v2271_v21, 1  ;;  %v698_v9 = vrot.slane %v2009_v38, 1  ;;  %v690_v11 = vsel %vm666_vm0, %v688_v56, %v689_v57  ;;  %v2345_v50 = vld [vmem:[%s2193_s30 + $0xa4] ss:$0 sps:$4 sm:$0x11]  }
  0x36   : > { %v528_v14 = vor.u32 %v527_v61, %v523_v58  ;;  %v532_v15 = vrot.slane %v530_v62, 1  ;;  %v549_v16 = vshll.u32 %v2305_v63, 16  ;;  %v545_v17 = vsel %vm413_vm1, %v540_v3, %v544_v60  ;;  %v2355_v58 = vld [vmem:[%s2193_s30 + $0xb4] sm:$0xff]   ;;  %v2360_v60 = vld [vmem:[%s2193_s30 + $0xc8] ss:$0 sps:$4 sm:$0x11]  }
  0x37   : > { %640 = vrot.lane.b32.xlu0 %v485_v36, %s2110_s5  ;;  %v559_v18 = vshrl.u32 %v2297_v55, 16  ;;  %v563_v19 = vrot.slane %v561_v5, 1  ;;  %v566_v20 = vshll.u32 %v2013_v4, 16  ;;  %v694_v24 = vrot.slane %v2281_v34, 1 }
  0x38   : > { %733 = vrot.lane.b32.xlu1 %v687_v39, %s2109_s4  ;;  %v695_v25 = vrot.slane %v2011_v45, 1  ;;  %v554_v26 = vshll.u32 %v2015_v10, 16  ;;  %v533_v27 = vsel %vm413_vm1, %v528_v14, %v532_v15  ;;  %v547_v28 = vshrl.u32 %v2305_v63, 16  ;;  %v2340_v45 = vld [vmem:[%s2193_s30 + $0xcc] sm:$0xff]  }
  0x39   : > { %v551_v29 = vrot.slane %v549_v16, 1  ;;  %v585_v30 = vshll.u32 %v2312_v8, 16  ;;  %v699_v33 = vsel %vm666_vm0, %v697_v6, %v698_v9  ;;  %v564_v36 = vor.u32 %v563_v19, %v559_v18  ;;  %v2025_v61 = vld [vmem:[%s2193_s30 + $0xd4] ss:$0 sps:$4 sm:$0x11]  }
  0x3a   : > { %v568_v37 = vrot.slane %v566_v20, 1  ;;  %v703_v38 = vrot.slane %v2297_v55, 1  ;;  %v704_v39 = vrot.slane %v2013_v4, 1  ;;  %v590_v40 = vshll.u32 %v2322_v23, 16  ;;  %v2028_v18 = vld [vmem:[%s2663_s1 + $0x10] sm:$0x3f]  }
  0x3b   : > { %731 = vrot.lane.b32.xlu0 %v684_v46, %s2109_s4  ;;  %v696_v41 = vsel %vm666_vm0, %v694_v24, %v695_v25  ;;  %v556_v42 = vrot.slane %v554_v26, 1  ;;  %v700_v43 = vrot.slane %v2305_v63, 1  ;;  %v701_v44 = vrot.slane %v2015_v10, 1  ;;  %v2026_v10 = vld [vmem:[%s2663_s1 + $0x8] sm:$0x3f]  }
  0x3c   : > { %646 = vrot.lane.b32.xlu1 %v521_v51, %s2110_s5  ;;  %v552_v46 = vor.u32 %v551_v29, %v547_v28  ;;  %v583_v48 = vshrl.u32 %v2312_v8, 16  ;;  %v587_v49 = vrot.slane %v585_v30, 1  ;;  %v573_v51 = vshll.u32 %v2331_v32, 16  ;;  %1927 = vmatprep.subr.msk.bf16.mxu1 %vm874_vm2, %v2026_v10 }
  0x3d   : > { %v569_v52 = vsel %vm413_vm1, %v564_v36, %v568_v37  ;;  %v705_v54 = vsel %vm666_vm0, %v703_v38, %v704_v39  ;;  %v592_v56 = vrot.slane %v590_v40, 1  ;;  %v571_v57 = vshrl.u32 %v2331_v32, 16  ;;  %v2023_v36 = vld [vmem:[%s2193_s30 + $0xbc] ss:$0 sps:$4 sm:$0x11]  }
  0x3e   : > { %v619_v62 = vshrl.u32 %v2340_v45, 16  ;;  %v718_v3 = vrot.slane %v2340_v45, 1  ;;  %v557_v4 = vsel %vm413_vm1, %v552_v46, %v556_v42  ;;  %v588_v5 = vor.u32 %v587_v49, %v583_v48 }
  0x3f   : > { %644 = vrot.lane.b32.xlu0 %v509_v59, %s2110_s5  ;;  %v702_v59 = vsel %vm666_vm0, %v700_v43, %v701_v44  ;;  %v575_v6 = vrot.slane %v573_v51, 1  ;;  %v578_v9 = vshll.u32 %v2345_v50, 16  ;;  %v609_v14 = vshll.u32 %v2350_v53, 16 }
  0x40   : > { %737 = vrot.lane.b32.xlu1 %v693_v1, %s2109_s4  ;;  %v621_v1 = vshll.u32 %v2340_v45, 16  ;;  %v626_v16 = vshll.u32 %v2025_v61, 16  ;;  %v709_v19 = vrot.slane %v2312_v8, 1  ;;  %v710_v20 = vrot.slane %v2322_v23, 1 }
  0x41   : > { %v876_v24 = vsel %vm874_vm2, %v2026_v10, 0  ;;  %v2390_v29 = vsel %vm874_vm2, %v2028_v18, 0  ;;  %v576_v23 = vor.u32 %v575_v6, %v571_v57  ;;  %v580_v30 = vrot.slane %v578_v9, 1 }
  0x42   : > { %v623_v15 = vrot.slane %v621_v1, 1  ;;  %1760 = vmatpush3.bf16.msra.mxu1 %v876_v24  ;;  %v597_v37 = vshll.u32 %v2355_v58, 16  ;;  %v593_v38 = vsel %vm413_vm1, %v588_v5, %v592_v56  ;;  %v611_v39 = vrot.slane %v609_v14, 1 }
  0x43   : > { %735 = vrot.lane.b32.xlu0 %v690_v11, %s2109_s4  ;;  %v2027_v11 = vld [vmem:[%s2663_s1] sm:$0x3f]   ;;  %v614_v40 = vshll.u32 %v2360_v60, 16  ;;  %v706_v42 = vrot.slane %v2331_v32, 1  ;;  %v707_v43 = vrot.slane %v2345_v50, 1  ;;  %v581_v44 = vsel %vm413_vm1, %v576_v23, %v580_v30 }
  0x44   : > { %650 = vrot.lane.b32.xlu1 %v545_v17, %s2110_s5  ;;  %v719_v17 = vrot.slane %v2025_v61, 1  ;;  %1928 = vmatprep.subr.msk.bf16.mxu0 %vm874_vm2, %v2027_v11  ;;  %v2385_v25 = vsel %vm874_vm2, %v2027_v11, 0  ;;  %v624_v26 = vor.u32 %v623_v15, %v619_v62  ;;  %v595_v46 = vshrl.u32 %v2355_v58, 16 }
  0x45   : > { %1794 = vmatpush3.bf16.msra.mxu0 %v2385_v25  ;;  %1929 = vmatprep.subr.msk.bf16.mxu1 %vm874_vm2, %v2027_v11  ;;  %v599_v48 = vrot.slane %v597_v37, 1  ;;  %v602_v49 = vshll.u32 %v2023_v36, 16  ;;  %v711_v51 = vsel %vm666_vm0, %v709_v19, %v710_v20  ;;  %v708_v56 = vsel %vm666_vm0, %v706_v42, %v707_v43 }
  0x46   : > { %v720_v28 = vsel %vm666_vm0, %v718_v3, %v719_v17  ;;  %1930 = vmatprep.subr.msk.bf16.mxu0 %vm874_vm2, %v2028_v18  ;;  %v715_v61 = vrot.slane %v2350_v53, 1  ;;  %v716_v62 = vrot.slane %v2360_v60, 1  ;;  %v712_v3 = vrot.slane %v2355_v58, 1 }
  0x47   : > { %648 = vrot.lane.b32.xlu0 %v533_v27, %s2110_s5  ;;  %v628_v27 = vrot.slane %v626_v16, 1  ;;  %v600_v57 = vor.u32 %v599_v48, %v595_v46  ;;  %v604_v50 = vrot.slane %v602_v49, 1 }
  0x48   : > { %741 = vrot.lane.b32.xlu1 %v699_v33, %s2109_s4  ;;  %v607_v33 = vshrl.u32 %v2350_v53, 16  ;;  %v717_v5 = vsel %vm666_vm0, %v715_v61, %v716_v62 }
  0x49   : > { %v605_v1 = vsel %vm413_vm1, %v600_v57, %v604_v50 }
  0x4b   : > { %739 = vrot.lane.b32.xlu0 %v696_v41, %s2109_s4  ;;  %v629_v41 = vsel %vm413_vm1, %v624_v26, %v628_v27 }
  0x4c   : > { %654 = vrot.lane.b32.xlu1 %v569_v52, %s2110_s5  ;;  %v612_v52 = vor.u32 %v611_v39, %v607_v33 }
  0x4f   : > { %652 = vrot.lane.b32.xlu0 %v557_v4, %s2110_s5  ;;  %v713_v4 = vrot.slane %v2023_v36, 1 }
  0x50   : > { %745 = vrot.lane.b32.xlu1 %v705_v54, %s2109_s4  ;;  %v616_v54 = vrot.slane %v614_v40, 1 }
  0x51   : > { %v714_v6 = vsel %vm666_vm0, %v712_v3, %v713_v4 }
  0x53   : > { %743 = vrot.lane.b32.xlu0 %v702_v59, %s2109_s4  ;;  %v617_v59 = vsel %vm413_vm1, %v612_v52, %v616_v54 }
  0x54   : > { %658 = vrot.lane.b32.xlu1 %v593_v38, %s2110_s5 }
  0x57   : > { %656 = vrot.lane.b32.xlu0 %v581_v44, %s2110_s5 }
  0x58   : > { %749 = vrot.lane.b32.xlu1 %v711_v51, %s2109_s4 }
  0x5b   : > { %747 = vrot.lane.b32.xlu0 %v708_v56, %s2109_s4 }
  0x5c   : > { %662 = vrot.lane.b32.xlu1 %v617_v59, %s2110_s5 }
  0x5f   : > { %660 = vrot.lane.b32.xlu0 %v605_v1, %s2110_s5 }
  0x60   : > { %753 = vrot.lane.b32.xlu1 %v717_v5, %s2109_s4 }
  0x63   : > { %751 = vrot.lane.b32.xlu0 %v714_v6, %s2109_s4 }
  0x64   : > { %755 = vrot.lane.b32.xlu1 %v720_v28, %s2109_s4 }
  0x67   : > { %664 = vrot.lane.b32.xlu0 %v629_v41, %s2110_s5  ;;  %s2605_s5 = scalar_lea.hbm %s2665_s3, %s1707_s27 }
  0x91   : > { %v722_v60 = vpop.permute.xlu1 %721 }
  0x95   : > { %v631_v9 = vpop.permute.xlu0 %630 }
  0x96   : > { %v759_v10 = vsel %vm757_vm3, %v2196_v0, %v631_v9  ;;  %v635_v11 = vpop.permute.xlu1 %634 }
  0x97   : > { %v796_v14 = vsel %vm794_vm4, %v759_v10, %v722_v60  ;;  %v763_v17 = vsel %vm757_vm3, %v2200_v2, %v635_v11 }
  0x98   : > { %1795 = vmatprep.mubr.msk.bf16.mxu0 %vm841_vm5, %v796_v14 }
  0x99   : > { %v633_v15 = vpop.permute.xlu0 %632 }
  0x9a   : > { %v726_v16 = vpop.permute.xlu1 %725  ;;  %v761_v18 = vsel %vm757_vm3, %v2210_v13, %v633_v15 }
  0x9b   : > { %v800_v26 = vsel %vm794_vm4, %v763_v17, %v726_v16 }
  0x9d   : > { %v724_v19 = vpop.permute.xlu0 %723 }
  0x9e   : > { %v639_v20 = vpop.permute.xlu1 %638  ;;  %v798_v24 = vsel %vm794_vm4, %v761_v18, %v724_v19 }
  0x9f   : > { %1761 = vmatprep.mubr.msk.bf16.mxu1 %vm841_vm5, %v798_v24  ;;  %1796 = vmatmul.mubr.msk.bf16.vlgmr.msra.gmra.mrb[0].mxu0 %vm841_vm5, %v798_v24  ;;  %v767_v13 = vsel %vm757_vm3, %v2218_v22, %v639_v20 }
  0xa0   : > { %1762 = vmatmul.mubr.msk.bf16.vlgmr.msra.gmra.mrb[0].mxu1 %vm841_vm5, %v800_v26  ;;  %1799 = vmatprep.mubr.msk.bf16.mxu0 %vm841_vm5, %v800_v26 }
  0xa1   : > { %1862 = vmatpush3.bf16.msra.mxu1 %v2385_v25  ;;  %1828 = vmatpush3.bf16.msra.mxu0 %v2390_v29  ;;  %v637_v0 = vpop.permute.xlu0 %636 }
  0xa2   : > { %v730_v2 = vpop.permute.xlu1 %729  ;;  %v765_v27 = vsel %vm757_vm3, %v2223_v31, %v637_v0 }
  0xa3   : > { %v804_v33 = vsel %vm794_vm4, %v767_v13, %v730_v2 }
  0xa5   : > { %v728_v28 = vpop.permute.xlu0 %727 }
  0xa6   : > { %v802_v23 = vsel %vm794_vm4, %v765_v27, %v728_v28  ;;  %v643_v30 = vpop.permute.xlu1 %642 }
  0xa7   : > { %1765 = vmatprep.mubr.msk.bf16.mxu1 %vm841_vm5, %v802_v23  ;;  %1800 = vmatmul.mubr.msk.bf16.gmra.mrb[4].mxu0 %vm841_vm5, %v802_v23  ;;  %v771_v22 = vsel %vm757_vm3, %v2229_v35, %v643_v30 }
  0xa8   : > { %1766 = vmatmul.mubr.msk.bf16.gmra.mrb[4].mxu1 %vm841_vm5, %v804_v33  ;;  %1803 = vmatprep.mubr.msk.bf16.mxu0 %vm841_vm5, %v804_v33 }
  0xa9   : > { %v641_v25 = vpop.permute.xlu0 %640 }
  0xaa   : > { %v734_v29 = vpop.permute.xlu1 %733  ;;  %v769_v31 = vsel %vm757_vm3, %v2241_v47, %v641_v25 }
  0xab   : > { %v808_v39 = vsel %vm794_vm4, %v771_v22, %v734_v29 }
  0xad   : > { %v732_v36 = vpop.permute.xlu0 %731 }
  0xae   : > { %v806_v37 = vsel %vm794_vm4, %v769_v31, %v732_v36  ;;  %v647_v38 = vpop.permute.xlu1 %646  ;;  %v2536_v36 = vld [vmem:[%s2664_s2] ss:$0 sm:$0xff] }
  0xaf   : > { %1769 = vmatprep.mubr.msk.bf16.mxu1 %vm841_vm5, %v806_v37  ;;  %1804 = vmatmul.mubr.msk.bf16.gmra.mrb[8].mxu0 %vm841_vm5, %v806_v37  ;;  %v775_v35 = vsel %vm757_vm3, %v2259_v7, %v647_v38 }
  0xb0   : > { %1770 = vmatmul.mubr.msk.bf16.gmra.mrb[8].mxu1 %vm841_vm5, %v808_v39  ;;  %1807 = vmatprep.mubr.msk.bf16.mxu0 %vm841_vm5, %v808_v39 }
  0xb1   : > { %v645_v40 = vpop.permute.xlu0 %644 }
  0xb2   : > { %v738_v41 = vpop.permute.xlu1 %737  ;;  %v773_v47 = vsel %vm757_vm3, %v2262_v12, %v645_v40 }
  0xb3   : > { %v812_v46 = vsel %vm794_vm4, %v775_v35, %v738_v41 }
  0xb5   : > { %v736_v42 = vpop.permute.xlu0 %735 }
  0xb6   : > { %v810_v43 = vsel %vm794_vm4, %v773_v47, %v736_v42  ;;  %v651_v44 = vpop.permute.xlu1 %650 }
  0xb7   : > { %1773 = vmatprep.mubr.msk.bf16.mxu1 %vm841_vm5, %v810_v43  ;;  %1808 = vmatmul.mubr.msk.bf16.gmra.mrb[12].mxu0 %vm841_vm5, %v810_v43  ;;  %v779_v7 = vsel %vm757_vm3, %v2271_v21, %v651_v44 }
  0xb8   : > { %1774 = vmatmul.mubr.msk.bf16.gmra.mrb[12].mxu1 %vm841_vm5, %v812_v46  ;;  %1829 = vmatprep.mubr.msk.bf16.mxu0 %vm841_vm5, %v800_v26 }
  0xb9   : > { %v649_v48 = vpop.permute.xlu0 %648 }
  0xba   : > { %v742_v49 = vpop.permute.xlu1 %741  ;;  %v777_v12 = vsel %vm757_vm3, %v2281_v34, %v649_v48 }
  0xbb   : > { %v816_v56 = vsel %vm794_vm4, %v779_v7, %v742_v49 }
  0xbd   : > { %v740_v51 = vpop.permute.xlu0 %739 }
  0xbe   : > { %v814_v52 = vsel %vm794_vm4, %v777_v12, %v740_v51  ;;  %v655_v54 = vpop.permute.xlu1 %654 }
  0xbf   : > { %1777 = vmatprep.mubr.msk.bf16.mxu1 %vm841_vm5, %v814_v52  ;;  %1830 = vmatmul.mubr.msk.bf16.vlgmr.msra.gmra.mrb[0].mxu0 %vm841_vm5, %v802_v23  ;;  %v783_v21 = vsel %vm757_vm3, %v2297_v55, %v655_v54 }
  0xc0   : > { %1778 = vmatmul.mubr.msk.bf16.gmra.mrb[16].mxu1 %vm841_vm5, %v816_v56  ;;  %1833 = vmatprep.mubr.msk.bf16.mxu0 %vm841_vm5, %v804_v33 }
  0xc1   : > { %v653_v57 = vpop.permute.xlu0 %652 }
  0xc2   : > { %v746_v50 = vpop.permute.xlu1 %745  ;;  %v781_v34 = vsel %vm757_vm3, %v2305_v63, %v653_v57 }
  0xc3   : > { %v820_v1 = vsel %vm794_vm4, %v783_v21, %v746_v50 }
  0xc5   : > { %v744_v59 = vpop.permute.xlu0 %743 }
  0xc6   : > { %v818_v61 = vsel %vm794_vm4, %v781_v34, %v744_v59  ;;  %v659_v62 = vpop.permute.xlu1 %658 }
  0xc7   : > { %1781 = vmatprep.mubr.msk.bf16.mxu1 %vm841_vm5, %v818_v61  ;;  %1834 = vmatmul.mubr.msk.bf16.gmra.mrb[4].mxu0 %vm841_vm5, %v806_v37  ;;  %v787_v55 = vsel %vm757_vm3, %v2312_v8, %v659_v62 }
  0xc8   : > { %1782 = vmatmul.mubr.msk.bf16.gmra.mrb[20].mxu1 %vm841_vm5, %v820_v1  ;;  %1837 = vmatprep.mubr.msk.bf16.mxu0 %vm841_vm5, %v808_v39 }
  0xc9   : > { %v657_v3 = vpop.permute.xlu0 %656 }
  0xca   : > { %v750_v4 = vpop.permute.xlu1 %749  ;;  %v785_v63 = vsel %vm757_vm3, %v2331_v32, %v657_v3 }
  0xcb   : > { %v824_v9 = vsel %vm794_vm4, %v787_v55, %v750_v4 }
  0xcd   : > { %v748_v5 = vpop.permute.xlu0 %747 }
  0xce   : > { %v822_v6 = vsel %vm794_vm4, %v785_v63, %v748_v5  ;;  %v663_v60 = vpop.permute.xlu1 %662 }
  0xcf   : > { %1785 = vmatprep.mubr.msk.bf16.mxu1 %vm841_vm5, %v822_v6  ;;  %1838 = vmatmul.mubr.msk.bf16.gmra.mrb[8].mxu0 %vm841_vm5, %v810_v43  ;;  %v791_v8 = vsel %vm757_vm3, %v2350_v53, %v663_v60 }
  0xd0   : > { %1786 = vmatmul.mubr.msk.bf16.gmra.mrb[24].mxu1 %vm841_vm5, %v824_v9  ;;  %1841 = vmatprep.mubr.msk.bf16.mxu0 %vm841_vm5, %v812_v46 }
  0xd1   : > { %v661_v10 = vpop.permute.xlu0 %660 }
  0xd2   : > { %v754_v11 = vpop.permute.xlu1 %753  ;;  %v789_v32 = vsel %vm757_vm3, %v2355_v58, %v661_v10 }
  0xd3   : > { %v828_v16 = vsel %vm794_vm4, %v791_v8, %v754_v11 }
  0xd5   : > { %v752_v14 = vpop.permute.xlu0 %751 }
  0xd6   : > { %v826_v15 = vsel %vm794_vm4, %v789_v32, %v752_v14  ;;  %v756_v17 = vpop.permute.xlu1 %755 }
  0xd7   : > { %1789 = vmatprep.mubr.msk.bf16.mxu1 %vm841_vm5, %v826_v15  ;;  %1842 = vmatmul.mubr.msk.bf16.gmra.mrb[12].mxu0 %vm841_vm5, %v814_v52 }
  0xd8   : > { %1790 = vmatmul.mubr.msk.bf16.gmra.mrb[28].mxu1 %vm841_vm5, %v828_v16  ;;  %1845 = vmatprep.mubr.msk.bf16.mxu0 %vm841_vm5, %v816_v56 }
  0xd9   : > { %1811 = vmatprep.mubr.msk.bf16.mxu1 %vm841_vm5, %v812_v46  ;;  %v665_v53 = vpop.permute.xlu0 %664 }
  0xda   : > { %v793_v58 = vsel %vm757_vm3, %v2340_v45, %v665_v53 }
  0xdb   : > { %v830_v18 = vsel %vm794_vm4, %v793_v58, %v756_v17 }
  0xdf   : > { %1846 = vmatmul.mubr.msk.bf16.gmra.mrb[16].mxu0 %vm841_vm5, %v818_v61 }
  0xe0   : > { %1812 = vmatmul.mubr.msk.bf16.vlgmr.msra.gmra.mrb[16].mxu1 %vm841_vm5, %v814_v52  ;;  %1849 = vmatprep.mubr.msk.bf16.mxu0 %vm841_vm5, %v820_v1 }
  0xe1   : > { %1815 = vmatprep.mubr.msk.bf16.mxu1 %vm841_vm5, %v816_v56 }
  0xe7   : > { %1850 = vmatmul.mubr.msk.bf16.gmra.mrb[20].mxu0 %vm841_vm5, %v822_v6 }
  0xe8   : > { %1816 = vmatmul.mubr.msk.bf16.gmra.mrb[20].mxu1 %vm841_vm5, %v818_v61  ;;  %1853 = vmatprep.mubr.msk.bf16.mxu0 %vm841_vm5, %v824_v9 }
  0xe9   : > { %1819 = vmatprep.mubr.msk.bf16.mxu1 %vm841_vm5, %v820_v1 }
  0xef   : > { %1854 = vmatmul.mubr.msk.bf16.gmra.mrb[24].mxu0 %vm841_vm5, %v826_v15 }
  0xf0   : > { %1820 = vmatmul.mubr.msk.bf16.gmra.mrb[24].mxu1 %vm841_vm5, %v822_v6  ;;  %1857 = vmatprep.mubr.msk.bf16.mxu0 %vm841_vm5, %v828_v16 }
  0xf1   : > { %1823 = vmatprep.mubr.msk.bf16.mxu1 %vm841_vm5, %v824_v9 }
  0xf7   : > { %1858 = vmatmul.mubr.msk.bf16.gmra.mrb[28].mxu0 %vm841_vm5, %v830_v18 }
  0xf8   : > { %1824 = vmatmul.mubr.msk.bf16.gmra.mrb[28].mxu1 %vm841_vm5, %v826_v15 }
 0x173   : > { %v1763_v19 = vpop.f32.mrb[0].mxu1 }
 0x174   : > { %v912_v20 = vpop.f32.mrb[1].mxu1 }
 0x175   : > { %v1764_v24 = vpop.f32.mrb[2].mxu1 }
 0x176   : > { %v915_v26 = vpop.f32.mrb[3].mxu1 }
 0x17b   : > { %v1767_v0 = vpop.f32.mrb[4].mxu1 }
 0x17c   : > { %v928_v2 = vpop.f32.mrb[5].mxu1 }
 0x17d   : > { %v1768_v13 = vpop.f32.mrb[6].mxu1 }
 0x17e   : > { %v931_v27 = vpop.f32.mrb[7].mxu1 }
 0x183   : > { %v1771_v28 = vpop.f32.mrb[8].mxu1 }
 0x184   : > { %v944_v23 = vpop.f32.mrb[9].mxu1 }
 0x185   : > { %v1772_v45 = vpop.f32.mrb[10].mxu1 }
 0x186   : > { %v947_v30 = vpop.f32.mrb[11].mxu1 }
 0x18b   : > { %v1775_v33 = vpop.f32.mrb[12].mxu1 }
 0x18c   : > { %v960_v25 = vpop.f32.mrb[13].mxu1 }
 0x18d   : > { %v1776_v29 = vpop.f32.mrb[14].mxu1 }
 0x18e   : > { %v963_v22 = vpop.f32.mrb[15].mxu1 }
 0x192   : > { %v1831_v31 = vpop.f32.mrb[0].mxu0 }
 0x193   : > { %v1863_v37 = vadd.f32 %v1831_v31, %v1763_v19  ;;  %v1257_v38 = vpop.f32.mrb[1].mxu0 }
 0x194   : > { %v1864_v39 = vadd.f32 %v1257_v38, %v912_v20  ;;  %v1832_v40 = vpop.f32.mrb[2].mxu0 }
 0x195   : > { %v1425_v41 = vadd.f32 %v1863_v37, %v2536_v36  ;;  %v1865_v35 = vadd.f32 %v1832_v40, %v1764_v24  ;;  %v1260_v47 = vpop.f32.mrb[3].mxu0 }
 0x196   : > { %v1423_v42 = vadd.f32 %v1864_v39, %v2536_v36  ;;  %v1866_v43 = vadd.f32 %v1260_v47, %v915_v26 }
 0x197   : > { %1457 = vst [vmem:[%s2540_s26 + $0x10] sm:$0xff] %v1425_v41  ;;  %v1426_v44 = vadd.f32 %v1865_v35, %v2536_v36 }
 0x198   : > { %1455 = vst [vmem:[%s2540_s26] sm:$0xff] %v1423_v42  ;;  %v1424_v46 = vadd.f32 %v1866_v43, %v2536_v36 }
 0x199   : > { %1458 = vst [vmem:[%s2540_s26 + $0x18] sm:$0xff] %v1426_v44 }
 0x19a   : > { %1456 = vst [vmem:[%s2540_s26 + $0x8] sm:$0xff] %v1424_v46  ;;  %v1835_v48 = vpop.f32.mrb[4].mxu0 }
 0x19b   : > { %v1867_v49 = vadd.f32 %v1835_v48, %v1767_v0  ;;  %v1273_v7 = vpop.f32.mrb[5].mxu0 }
 0x19c   : > { %v1868_v12 = vadd.f32 %v1273_v7, %v928_v2  ;;  %v1836_v51 = vpop.f32.mrb[6].mxu0 }
 0x19d   : > { %v1429_v52 = vadd.f32 %v1867_v49, %v2536_v36  ;;  %v1869_v54 = vadd.f32 %v1836_v51, %v1768_v13  ;;  %v1276_v56 = vpop.f32.mrb[7].mxu0 }
 0x19e   : > { %v1427_v57 = vadd.f32 %v1868_v12, %v2536_v36  ;;  %v1870_v50 = vadd.f32 %v1276_v56, %v931_v27 }
 0x19f   : > { %1461 = vst [vmem:[%s2540_s26 + $0x30] sm:$0xff] %v1429_v52  ;;  %v1430_v21 = vadd.f32 %v1869_v54, %v2536_v36 }
 0x1a0   : > { %1459 = vst [vmem:[%s2540_s26 + $0x20] sm:$0xff] %v1427_v57  ;;  %v1428_v34 = vadd.f32 %v1870_v50, %v2536_v36 }
 0x1a1   : > { %1462 = vst [vmem:[%s2540_s26 + $0x38] sm:$0xff] %v1430_v21 }
 0x1a2   : > { %1460 = vst [vmem:[%s2540_s26 + $0x28] sm:$0xff] %v1428_v34  ;;  %v1839_v59 = vpop.f32.mrb[8].mxu0 }
 0x1a3   : > { %v1871_v61 = vadd.f32 %v1839_v59, %v1771_v28  ;;  %v1289_v62 = vpop.f32.mrb[9].mxu0 }
 0x1a4   : > { %v1872_v1 = vadd.f32 %v1289_v62, %v944_v23  ;;  %v1840_v3 = vpop.f32.mrb[10].mxu0 }
 0x1a5   : > { %v1433_v4 = vadd.f32 %v1871_v61, %v2536_v36  ;;  %v1873_v55 = vadd.f32 %v1840_v3, %v1772_v45  ;;  %v1292_v63 = vpop.f32.mrb[11].mxu0 }
 0x1a6   : > { %v1431_v5 = vadd.f32 %v1872_v1, %v2536_v36  ;;  %v1874_v6 = vadd.f32 %v1292_v63, %v947_v30 }
 0x1a7   : > { %1465 = vst [vmem:[%s2540_s26 + $0x50] sm:$0xff] %v1433_v4  ;;  %v1434_v60 = vadd.f32 %v1873_v55, %v2536_v36 }
 0x1a8   : > { %1463 = vst [vmem:[%s2540_s26 + $0x40] sm:$0xff] %v1431_v5  ;;  %v1432_v9 = vadd.f32 %v1874_v6, %v2536_v36 }
 0x1a9   : > { %1466 = vst [vmem:[%s2540_s26 + $0x58] sm:$0xff] %v1434_v60 }
 0x1aa   : > { %1464 = vst [vmem:[%s2540_s26 + $0x48] sm:$0xff] %v1432_v9  ;;  %v1843_v10 = vpop.f32.mrb[12].mxu0 }
 0x1ab   : > { %v1875_v8 = vadd.f32 %v1843_v10, %v1775_v33  ;;  %v1305_v11 = vpop.f32.mrb[13].mxu0 }
 0x1ac   : > { %v1876_v32 = vadd.f32 %v1305_v11, %v960_v25  ;;  %v1844_v14 = vpop.f32.mrb[14].mxu0 }
 0x1ad   : > { %v1437_v15 = vadd.f32 %v1875_v8, %v2536_v36  ;;  %v1877_v16 = vadd.f32 %v1844_v14, %v1776_v29  ;;  %v1308_v53 = vpop.f32.mrb[15].mxu0 }
 0x1ae   : > { %v1435_v58 = vadd.f32 %v1876_v32, %v2536_v36  ;;  %v1878_v17 = vadd.f32 %v1308_v53, %v963_v22 }
 0x1af   : > { %1469 = vst [vmem:[%s2540_s26 + $0x70] sm:$0xff] %v1437_v15  ;;  %v1438_v18 = vadd.f32 %v1877_v16, %v2536_v36 }
 0x1b0   : > { %1467 = vst [vmem:[%s2540_s26 + $0x60] sm:$0xff] %v1435_v58  ;;  %v1436_v19 = vadd.f32 %v1878_v17, %v2536_v36 }
 0x1b1   : > { %1470 = vst [vmem:[%s2540_s26 + $0x78] sm:$0xff] %v1438_v18 }
 0x1b2   : > { %1468 = vst [vmem:[%s2540_s26 + $0x68] sm:$0xff] %v1436_v19  ;;  %v1847_v20 = vpop.f32.mrb[16].mxu0 }
 0x1b3   : > { %v1813_v24 = vpop.f32.mrb[16].mxu1  ;;  %v1321_v26 = vpop.f32.mrb[17].mxu0 }
 0x1b4   : > { %v1879_v0 = vadd.f32 %v1847_v20, %v1813_v24  ;;  %v1147_v2 = vpop.f32.mrb[17].mxu1  ;;  %v1848_v13 = vpop.f32.mrb[18].mxu0 }
 0x1b5   : > { %v1880_v27 = vadd.f32 %v1321_v26, %v1147_v2  ;;  %v1814_v28 = vpop.f32.mrb[18].mxu1  ;;  %v1324_v23 = vpop.f32.mrb[19].mxu0 }
 0x1b6   : > { %v1441_v45 = vadd.f32 %v1879_v0, %v2536_v36  ;;  %v1881_v30 = vadd.f32 %v1848_v13, %v1814_v28  ;;  %v1150_v33 = vpop.f32.mrb[19].mxu1 }
 0x1b7   : > { %v1439_v25 = vadd.f32 %v1880_v27, %v2536_v36  ;;  %v1882_v29 = vadd.f32 %v1324_v23, %v1150_v33 }
 0x1b8   : > { %1473 = vst [vmem:[%s2540_s26 + $0x90] sm:$0xff] %v1441_v45  ;;  %v1442_v22 = vadd.f32 %v1881_v30, %v2536_v36 }
 0x1b9   : > { %1471 = vst [vmem:[%s2540_s26 + $0x80] sm:$0xff] %v1439_v25  ;;  %v1440_v31 = vadd.f32 %v1882_v29, %v2536_v36 }
 0x1ba   : > { %1474 = vst [vmem:[%s2540_s26 + $0x98] sm:$0xff] %v1442_v22  ;;  %v1851_v37 = vpop.f32.mrb[20].mxu0 }
 0x1bb   : > { %1472 = vst [vmem:[%s2540_s26 + $0x88] sm:$0xff] %v1440_v31  ;;  %v1817_v38 = vpop.f32.mrb[20].mxu1  ;;  %v1337_v39 = vpop.f32.mrb[21].mxu0 }
 0x1bc   : > { %v1883_v40 = vadd.f32 %v1851_v37, %v1817_v38  ;;  %v1163_v41 = vpop.f32.mrb[21].mxu1  ;;  %v1852_v35 = vpop.f32.mrb[22].mxu0 }
 0x1bd   : > { %v1884_v47 = vadd.f32 %v1337_v39, %v1163_v41  ;;  %v1818_v42 = vpop.f32.mrb[22].mxu1  ;;  %v1340_v43 = vpop.f32.mrb[23].mxu0 }
 0x1be   : > { %v1445_v44 = vadd.f32 %v1883_v40, %v2536_v36  ;;  %v1885_v46 = vadd.f32 %v1852_v35, %v1818_v42  ;;  %v1166_v48 = vpop.f32.mrb[23].mxu1 }
 0x1bf   : > { %v1443_v49 = vadd.f32 %v1884_v47, %v2536_v36  ;;  %v1886_v7 = vadd.f32 %v1340_v43, %v1166_v48 }
 0x1c0   : > { %1477 = vst [vmem:[%s2540_s26 + $0xb0] sm:$0xff] %v1445_v44  ;;  %v1446_v12 = vadd.f32 %v1885_v46, %v2536_v36 }
 0x1c1   : > { %1475 = vst [vmem:[%s2540_s26 + $0xa0] sm:$0xff] %v1443_v49  ;;  %v1444_v51 = vadd.f32 %v1886_v7, %v2536_v36 }
 0x1c2   : > { %1478 = vst [vmem:[%s2540_s26 + $0xb8] sm:$0xff] %v1446_v12  ;;  %v1855_v52 = vpop.f32.mrb[24].mxu0 }
 0x1c3   : > { %1476 = vst [vmem:[%s2540_s26 + $0xa8] sm:$0xff] %v1444_v51  ;;  %v1821_v54 = vpop.f32.mrb[24].mxu1  ;;  %v1353_v56 = vpop.f32.mrb[25].mxu0 }
 0x1c4   : > { %v1887_v57 = vadd.f32 %v1855_v52, %v1821_v54  ;;  %v1179_v50 = vpop.f32.mrb[25].mxu1  ;;  %v1856_v21 = vpop.f32.mrb[26].mxu0 }
 0x1c5   : > { %v1888_v34 = vadd.f32 %v1353_v56, %v1179_v50  ;;  %v1822_v59 = vpop.f32.mrb[26].mxu1  ;;  %v1356_v61 = vpop.f32.mrb[27].mxu0 }
 0x1c6   : > { %v1449_v62 = vadd.f32 %v1887_v57, %v2536_v36  ;;  %v1889_v1 = vadd.f32 %v1856_v21, %v1822_v59  ;;  %v1182_v3 = vpop.f32.mrb[27].mxu1 }
 0x1c7   : > { %v1447_v4 = vadd.f32 %v1888_v34, %v2536_v36  ;;  %v1890_v55 = vadd.f32 %v1356_v61, %v1182_v3 }
 0x1c8   : > { %1481 = vst [vmem:[%s2540_s26 + $0xd0] sm:$0xff] %v1449_v62  ;;  %v1450_v63 = vadd.f32 %v1889_v1, %v2536_v36 }
 0x1c9   : > { %1479 = vst [vmem:[%s2540_s26 + $0xc0] sm:$0xff] %v1447_v4  ;;  %v1448_v5 = vadd.f32 %v1890_v55, %v2536_v36 }
 0x1ca   : > { %1482 = vst [vmem:[%s2540_s26 + $0xd8] sm:$0xff] %v1450_v63  ;;  %v1859_v6 = vpop.f32.mrb[28].mxu0 }
 0x1cb   : > { %1480 = vst [vmem:[%s2540_s26 + $0xc8] sm:$0xff] %v1448_v5  ;;  %v1825_v60 = vpop.f32.mrb[28].mxu1  ;;  %v1369_v9 = vpop.f32.mrb[29].mxu0 }
 0x1cc   : > { %v1891_v10 = vadd.f32 %v1859_v6, %v1825_v60  ;;  %v1195_v8 = vpop.f32.mrb[29].mxu1  ;;  %v1860_v11 = vpop.f32.mrb[30].mxu0 }
 0x1cd   : > { %v1892_v32 = vadd.f32 %v1369_v9, %v1195_v8  ;;  %v1826_v14 = vpop.f32.mrb[30].mxu1  ;;  %v1372_v15 = vpop.f32.mrb[31].mxu0 }
 0x1ce   : > { %v1453_v16 = vadd.f32 %v1891_v10, %v2536_v36  ;;  %v1893_v53 = vadd.f32 %v1860_v11, %v1826_v14  ;;  %v1198_v58 = vpop.f32.mrb[31].mxu1 }
 0x1cf   : > { %v1451_v17 = vadd.f32 %v1892_v32, %v2536_v36  ;;  %v1894_v18 = vadd.f32 %v1372_v15, %v1198_v58 }
 0x1d0   : > { %1485 = vst [vmem:[%s2540_s26 + $0xf0] sm:$0xff] %v1453_v16  ;;  %v1454_v19 = vadd.f32 %v1893_v53, %v2536_v36 }
 0x1d1   : > { %1483 = vst [vmem:[%s2540_s26 + $0xe0] sm:$0xff] %v1451_v17  ;;  %v1452_v20 = vadd.f32 %v1894_v18, %v2536_v36 }
 0x1d2   : > { %1486 = vst [vmem:[%s2540_s26 + $0xf8] sm:$0xff] %v1454_v19 }
 0x1d3   : > { %1484 = vst [vmem:[%s2540_s26 + $0xe8] sm:$0xff] %v1452_v20 }
 0x1d4   : > { %2042 = shalt.err (!%p2039_p5)
}
 0x1d5   : > { %s2043_s10 = scalar_lea.hbm %s2605_s5, 4096  ;;  %s2047_s19 = scalar_lea.hbm %s2665_s3, 8192 }
 0x1d6   : > { %p2044_p6 = scmp.ne.s32.totalorder %s2605_s5, %s2043_s10  ;;  %p2048_p10 = scmp.lt.u32.totalorder %s2605_s5, %s2665_s3 }
 0x1d7   : > { %p2049_p11 = scmp.lt.u32.totalorder %s2047_s19, %s2043_s10  ;;  %p2051_p13 = scmp.lt.u32.totalorder %s2043_s10, %s2605_s5 }
 0x1d8   : > { %p2045_p7 = pnand %p2044_p6, %p2173_p4 }
 0x1d9   : > { %p2050_p12 = por %p2049_p11, %p2048_p10 }
 0x1da   : > { %p2046_p9 = pneg %p2045_p7 }
 0x1db   : > { %p2052_p0 = por %p2051_p13, %p2050_p12 }
 0x1dd   : > { %p2053_p1 = pnand %p2052_p0, %p2046_p9 }
 0x1df   : > { %2056 = shalt.err (!%p2053_p1)
}
 0x1e0   : > { %s2112_s26 = smov 128  }
 0x1e1   : > { %1932 = dma.vmem_to_hbm [thread:$0]  (%p2173_p4), %s2609_s28, 4096, %s2605_s5, %s2615_s15, %s2112_s26, %s2112_s26, %s2109_s4  }
 0x1e2 PF: > { %p1938_p2 = scmp.ge.s32.totalorder %s2107_s17, 2  ;;  %s1517_s27 = sand.u32 1, %s2087_s12  }
 0x1e3   : > { %s1518_s29 = scalar_lea.sflag [#allocation3], %s1517_s27 }
 0x1e4   : > { %p1935_p3 = pnand %p1938_p2, %p2180_p8 }
 0x1e6   : > { %2082 = dma.done.wait (!%p1935_p3), %s1518_s29, 4096  }
 0x1e7   : > { %2084 = vsyncadd (!%p1935_p3), %s1518_s29, 4294963200  ;;  %s16_s17 = sadd.s32 1, %s2107_s17   ;;  %s2668_s12 = smov %s2091_s13 }
 0x1e8   : > { %p13_p5 = scmp.ge.s32.totalorder %s16_s17, 4   ;;  %s2669_s13 = smov %s2095_s14 }
 0x1e9   : > { %s2670_s14 = smov %s2186_s25  ;;  %s2671_s15 = smov %s2103_s16 }
 0x1ea   : > { %s2672_s16 = smov %s2674_s20  ;;  %15 = sbr.rel (!%p13_p5) target bundleno = 4 (0x4), region = 75 }
 0x1f1   :  { %1523 = vsyncpa [#allocation3], 1 }
 0x1f2   :  { %1525 = vsyncpa [#allocation3 + $0x1], 1 }

</bundles_post_ra>
